<compile_context>
chip_gen: v5e
topology: v5e:2x2
jax: 0.10.0
libtpu: 0.0.40
codegen_flags: <defaults>
</compile_context>

<pallas_src>
import math

import jax
import jax.numpy as jnp
from jax.experimental import pallas as pl
from jax.experimental.pallas import tpu as pltpu


# ----------------------------------------------------------------------------
# Mode A kernel: weights resident in VMEM, single grid axis over row tiles.
#   o = relu(x @ w1 + b1) @ w2 + b2
# ----------------------------------------------------------------------------
def _ffn_resident_kernel(x_ref, w1_ref, b1_ref, w2_ref, b2_ref, o_ref):
    h = jnp.dot(x_ref[...], w1_ref[...], preferred_element_type=jnp.float32)
    h = jnp.maximum(h + b1_ref[...].astype(jnp.float32), jnp.float32(0.0))
    # (eval-mode dropout == identity)
    # NOTE: h is cast to the weight dtype for the second MXU matmul; with bf16
    # weights this trades a little precision for MXU-native throughput.
    o = jnp.dot(h.astype(w2_ref.dtype), w2_ref[...],
                preferred_element_type=jnp.float32)
    o_ref[...] = (o + b2_ref[...].astype(jnp.float32)).astype(o_ref.dtype)


# ----------------------------------------------------------------------------
# Mode B kernel: weights streamed over a d_ff grid axis, f32 acc resident.
# ----------------------------------------------------------------------------
def _ffn_streamed_kernel(x_ref, w1_ref, b1_ref, w2_ref, b2_ref, o_ref, acc_ref):
    j = pl.program_id(1)  # d_ff tile index (reduction axis of the 2nd matmul)

    @pl.when(j == 0)
    def _init():
        acc_ref[...] = jnp.zeros_like(acc_ref)

    h = jnp.dot(x_ref[...], w1_ref[...], preferred_element_type=jnp.float32)
    h = jnp.maximum(h + b1_ref[...].astype(jnp.float32), jnp.float32(0.0))
    # (eval-mode dropout == identity)
    acc_ref[...] += jnp.dot(h.astype(w2_ref.dtype), w2_ref[...],
                            preferred_element_type=jnp.float32)

    @pl.when(j == pl.num_programs(1) - 1)
    def _finalize():
        o_ref[...] = (acc_ref[...] + b2_ref[...].astype(jnp.float32)).astype(
            o_ref.dtype)


# ----------------------------------------------------------------------------
# Sizing helpers (generation-aware VMEM budgeting).
# ----------------------------------------------------------------------------
def _vmem_budget_bytes() -> int:
    cap = 128 * 1024 * 1024
    try:
        info = pltpu.get_tpu_info()
        cap = int(getattr(info, "vmem_capacity_bytes", cap)) or cap
    except Exception:
        pass
    if cap <= 64 * 1024 * 1024:        # v7x: 64 MiB physical per TC
        return 52 * 1024 * 1024        # leave headroom for compiler scratch
    return 100 * 1024 * 1024           # v5e / v6e: 128 MiB physical


def _resident_bytes(tm, d_model, d_ff, db):
    w = 2 * (d_model * d_ff) * db * 2        # w1 + w2 (x2 pipeline buffers)
    xo = 2 * (tm * d_model) * db * 2          # x tile + out tile, double-buffered
    hid = tm * d_ff * 4                       # f32 hidden intermediate
    bias = 2 * (d_ff + d_model) * db
    return w + xo + hid + bias


def _streamed_bytes(tm, tf, d_model, d_ff, db):
    w = 2 * 2 * (d_model * tf) * db           # w1/w2 slices, double-buffered
    xo = 2 * (tm * d_model) * db * 2
    hid = tm * tf * 4
    acc = tm * d_model * 4
    bias = 2 * (tf + d_model) * db
    return w + xo + hid + acc + bias


# ----------------------------------------------------------------------------
# Wrapper.
# ----------------------------------------------------------------------------
def feed_forward_block(x, w1, b1, w2, b2, *, row_tile=None, ff_tile=None):
    """Fused position-wise FFN: relu(x @ w1 + b1) @ w2 + b2.

    x: (..., d_model), w1: (d_model, d_ff), w2: (d_ff, d_model).
    (PyTorch nn.Linear stores weights as (out, in); pass them transposed.)
    """
    orig_shape = x.shape
    d_model = orig_shape[-1]
    d_ff = w1.shape[-1]
    rows = math.prod(orig_shape[:-1]) if len(orig_shape) > 1 else 1

    x2d = x.reshape(rows, d_model)
    b1_2d = b1.reshape(1, d_ff)
    b2_2d = b2.reshape(1, d_model)

    db = max(jnp.dtype(x.dtype).itemsize, jnp.dtype(w1.dtype).itemsize)
    budget = _vmem_budget_bytes()

    def row_block(target):
        # rows <= target -> full-dim block (always layout-legal, no padding);
        # otherwise a multiple-of-8/16 target with a masked partial last block,
        # so no jnp.pad HBM round-trip of x is ever needed.
        return rows if rows <= target else target

    # ---------------- Mode A: grid-resident weights --------------------------
    tm_a = None
    if ff_tile is None:
        tm_targets = [row_tile] if row_tile is not None else [1024, 512, 256, 128]
        for tgt in tm_targets:
            tm = row_block(tgt)
            if _resident_bytes(tm, d_model, d_ff, db) <= budget:
                tm_a = tm
                break

    if tm_a is not None:
        out2d = pl.pallas_call(
            _ffn_resident_kernel,
            out_shape=jax.ShapeDtypeStruct((rows, d_model), x.dtype),
            grid_spec=pltpu.PrefetchScalarGridSpec(
                num_scalar_prefetch=0,
                grid=(pl.cdiv(rows, tm_a),),
                in_specs=[
                    pl.BlockSpec((tm_a, d_model), lambda i: (i, 0)),   # x
                    pl.BlockSpec((d_model, d_ff), lambda i: (0, 0)),   # w1 (resident)
                    pl.BlockSpec((1, d_ff), lambda i: (0, 0)),         # b1
                    pl.BlockSpec((d_ff, d_model), lambda i: (0, 0)),   # w2 (resident)
                    pl.BlockSpec((1, d_model), lambda i: (0, 0)),      # b2
                ],
                out_specs=pl.BlockSpec((tm_a, d_model), lambda i: (i, 0)),
            ),
            compiler_params=pltpu.CompilerParams(
                dimension_semantics=("parallel",),
                vmem_limit_bytes=budget,
            ),
        )(x2d, w1, b1_2d, w2, b2_2d)
        return out2d.reshape(orig_shape)

    # ---------------- Mode B: streamed weights over d_ff ---------------------
    tf_cands = [t for t in (2048, 1024, 512, 256, 128) if d_ff % t == 0]
    tf_cands = sorted(set(tf_cands + [d_ff]), reverse=True)
    if ff_tile is not None:
        assert d_ff % ff_tile == 0
        tf_cands = [ff_tile]
    if row_tile is not None:
        tm_targets = [row_tile]
    elif budget >= 90 * 1024 * 1024:          # v5e / v6e: bigger row tiles
        tm_targets = [1024, 512, 256, 128]
    else:                                      # v7x: tighter VMEM
        tm_targets = [512, 256, 128]

    tm_b, tf_b = None, None
    for tgt in tm_targets:
        tm = row_block(tgt)
        for tf in tf_cands:                    # largest tf that fits => fewest acc passes
            if _streamed_bytes(tm, tf, d_model, d_ff, db) <= budget:
                tm_b, tf_b = tm, tf
                break
        if tm_b is not None:
            break
    if tm_b is None:                           # last resort: smallest legal tiles
        tm_b, tf_b = row_block(128), min(tf_cands)

    out2d = pl.pallas_call(
        _ffn_streamed_kernel,
        out_shape=jax.ShapeDtypeStruct((rows, d_model), x.dtype),
        grid_spec=pltpu.PrefetchScalarGridSpec(
            num_scalar_prefetch=0,
            grid=(pl.cdiv(rows, tm_b), d_ff // tf_b),
            in_specs=[
                pl.BlockSpec((tm_b, d_model), lambda i, j: (i, 0)),    # x
                pl.BlockSpec((d_model, tf_b), lambda i, j: (0, j)),    # w1 slice
                pl.BlockSpec((1, tf_b), lambda i, j: (0, j)),          # b1 slice
                pl.BlockSpec((tf_b, d_model), lambda i, j: (j, 0)),    # w2 slice
                pl.BlockSpec((1, d_model), lambda i, j: (0, 0)),       # b2
            ],
            out_specs=pl.BlockSpec((tm_b, d_model), lambda i, j: (i, 0)),
            scratch_shapes=[pltpu.VMEM((tm_b, d_model), jnp.float32)],
        ),
        compiler_params=pltpu.CompilerParams(
            dimension_semantics=("parallel", "arbitrary"),
            vmem_limit_bytes=budget,
        ),
    )(x2d, w1, b1_2d, w2, b2_2d)
    return out2d.reshape(orig_shape)


if __name__ == "__main__":
    # Small shapes consistent with the module: batch=2, seq=8, d_model=32, d_ff=128.
    batch, seq, d_model, d_ff = 2, 8, 32, 128

    key = jax.random.PRNGKey(0)
    kx, kw1, kb1, kw2, kb2 = jax.random.split(key, 5)
    x = jax.random.normal(kx, (batch, seq, d_model), dtype=jnp.float32)
    w1 = jax.random.normal(kw1, (d_model, d_ff), dtype=jnp.float32) * 0.1
    b1 = jax.random.normal(kb1, (d_ff,), dtype=jnp.float32) * 0.1
    w2 = jax.random.normal(kw2, (d_ff, d_model), dtype=jnp.float32) * 0.1
    b2 = jax.random.normal(kb2, (d_model,), dtype=jnp.float32) * 0.1

    out = feed_forward_block(x, w1, b1, w2, b2)
    out = jax.block_until_ready(out)

    # Pure-JAX reference (eval-mode dropout == identity), full-precision matmuls.
    h_ref = jnp.maximum(
        jnp.dot(x, w1, precision=jax.lax.Precision.HIGHEST) + b1, 0.0
    )
    ref = jnp.dot(h_ref, w2, precision=jax.lax.Precision.HIGHEST) + b2

    assert out.shape == (batch, seq, d_model)
    assert jnp.allclose(out, ref, atol=2e-3, rtol=2e-3), (
        float(jnp.max(jnp.abs(out - ref)))
    )

    print("KERNEL_OK")
</pallas_src>

<mosaic_0001>
module attributes {stable_mosaic.version = 11 : i64} {
  func.func @_ffn_resident_kernel(%arg0: i32, %arg1: memref<16x32xf32, #tpu.memory_space<vmem>>, %arg2: memref<32x128xf32, #tpu.memory_space<vmem>>, %arg3: memref<1x128xf32, #tpu.memory_space<vmem>>, %arg4: memref<128x32xf32, #tpu.memory_space<vmem>>, %arg5: memref<1x32xf32, #tpu.memory_space<vmem>>, %arg6: memref<16x32xf32, #tpu.memory_space<vmem>>) attributes {dimension_semantics = [#tpu.dimension_semantics<parallel>], iteration_bounds = array<i64: 1>, scalar_prefetch = 0 : i64, scratch_operands = 0 : i64, tpu.core_type = #tpu.core_type<tc>, window_params = [{transform_indices = @transform_0, window_bounds = array<i64: 16, 32>}, {pipeline_mode = #tpu.pipeline_mode<synchronous>, transform_indices = @transform_1, window_bounds = array<i64: 32, 128>}, {pipeline_mode = #tpu.pipeline_mode<synchronous>, transform_indices = @transform_2, window_bounds = array<i64: 1, 128>}, {pipeline_mode = #tpu.pipeline_mode<synchronous>, transform_indices = @transform_3, window_bounds = array<i64: 128, 32>}, {pipeline_mode = #tpu.pipeline_mode<synchronous>, transform_indices = @transform_4, window_bounds = array<i64: 1, 32>}, {transform_indices = @transform_5, window_bounds = array<i64: 16, 32>}]} {
    %c0 = arith.constant 0 : index
    %c0_0 = arith.constant 0 : index
    %0 = vector.load %arg1[%c0, %c0_0] : memref<16x32xf32, #tpu.memory_space<vmem>>, vector<16x32xf32>
    %c0_1 = arith.constant 0 : index
    %c0_2 = arith.constant 0 : index
    %1 = vector.load %arg2[%c0_1, %c0_2] : memref<32x128xf32, #tpu.memory_space<vmem>>, vector<32x128xf32>
    %cst = arith.constant dense<0.000000e+00> : vector<16x128xf32>
    %2 = tpu.matmul %0, %1, %cst {dimension_numbers = #tpu.dot_dimension_numbers<[1], [0], [0], [1], [0, 0, 1, 1], [], []>} : vector<16x32xf32>, vector<32x128xf32>, vector<16x128xf32> -> vector<16x128xf32>
    %c0_3 = arith.constant 0 : index
    %c0_4 = arith.constant 0 : index
    %3 = vector.load %arg3[%c0_3, %c0_4] : memref<1x128xf32, #tpu.memory_space<vmem>>, vector<1x128xf32>
    %4 = vector.broadcast %3 : vector<1x128xf32> to vector<16x128xf32>
    %5 = arith.addf %2, %4 : vector<16x128xf32>
    %cst_5 = arith.constant 0.000000e+00 : f32
    %6 = vector.broadcast %cst_5 : f32 to vector<16x128xf32>
    %7 = arith.maximumf %5, %6 : vector<16x128xf32>
    %c0_6 = arith.constant 0 : index
    %c0_7 = arith.constant 0 : index
    %8 = vector.load %arg4[%c0_6, %c0_7] : memref<128x32xf32, #tpu.memory_space<vmem>>, vector<128x32xf32>
    %cst_8 = arith.constant dense<0.000000e+00> : vector<16x32xf32>
    %9 = tpu.matmul %7, %8, %cst_8 {dimension_numbers = #tpu.dot_dimension_numbers<[1], [0], [0], [1], [0, 0, 1, 1], [], []>} : vector<16x128xf32>, vector<128x32xf32>, vector<16x32xf32> -> vector<16x32xf32>
    %c0_9 = arith.constant 0 : index
    %c0_10 = arith.constant 0 : index
    %10 = vector.load %arg5[%c0_9, %c0_10] : memref<1x32xf32, #tpu.memory_space<vmem>>, vector<1x32xf32>
    %11 = vector.broadcast %10 : vector<1x32xf32> to vector<16x32xf32>
    %12 = arith.addf %9, %11 : vector<16x32xf32>
    %c0_11 = arith.constant 0 : index
    %c0_12 = arith.constant 0 : index
    %13 = vector.load %arg6[%c0_11, %c0_12] : memref<16x32xf32, #tpu.memory_space<vmem>>, vector<16x32xf32>
    tpu.vector_store %arg6[%c0_11, %c0_12], %12 {strides = array<i32>} : memref<16x32xf32, #tpu.memory_space<vmem>>, vector<16x32xf32>,
    return
  }
  func.func @transform_0(%arg0: i32) -> (i32, i32) {
    %c0_i32 = arith.constant 0 : i32
    %c0_i32_0 = arith.constant 0 : i32
    return %arg0, %c0_i32 : i32, i32
  }
  func.func @transform_1(%arg0: i32) -> (i32, i32) {
    %c0_i32 = arith.constant 0 : i32
    %c0_i32_0 = arith.constant 0 : i32
    %c0_i32_1 = arith.constant 0 : i32
    return %c0_i32, %c0_i32_0 : i32, i32
  }
  func.func @transform_2(%arg0: i32) -> (i32, i32) {
    %c0_i32 = arith.constant 0 : i32
    %c0_i32_0 = arith.constant 0 : i32
    %c0_i32_1 = arith.constant 0 : i32
    return %c0_i32, %c0_i32_0 : i32, i32
  }
  func.func @transform_3(%arg0: i32) -> (i32, i32) {
    %c0_i32 = arith.constant 0 : i32
    %c0_i32_0 = arith.constant 0 : i32
    %c0_i32_1 = arith.constant 0 : i32
    return %c0_i32, %c0_i32_0 : i32, i32
  }
  func.func @transform_4(%arg0: i32) -> (i32, i32) {
    %c0_i32 = arith.constant 0 : i32
    %c0_i32_0 = arith.constant 0 : i32
    %c0_i32_1 = arith.constant 0 : i32
    return %c0_i32, %c0_i32_0 : i32, i32
  }
  func.func @transform_5(%arg0: i32) -> (i32, i32) {
    %c0_i32 = arith.constant 0 : i32
    %c0_i32_0 = arith.constant 0 : i32
    return %arg0, %c0_i32 : i32, i32
  }
}

</mosaic_0001>

<bundles_post_ra>
// kernel: tpu_custom_call.1
= control target key start
LH: loop header
LB: loop body
LE: loop exit
PB: predicated region body
PF: predicated region fallthrough
CT: control target
= control target key end

     0   :  { %vm31_vm0 = vcmask 261120   ;;  %s287_s0 = inlined_call_operand.vmem [shape: f32[16,32], index: 0, kind: input, shape index: {}]   ;;  %s288_s1 = inlined_call_operand.vmem [shape: f32[32,128], index: 1, kind: input, shape index: {}]   ;;  %s289_s2 = inlined_call_operand.vmem [shape: f32[1,128], index: 2, kind: input, shape index: {}]   ;;  %s290_s3 = inlined_call_operand.vmem [shape: f32[128,32], index: 3, kind: input, shape index: {}]   ;;  %s291_s4 = inlined_call_operand.vmem [shape: f32[1,32], index: 4, kind: input, shape index: {}]   ;;  %s292_s5 = inlined_call_operand.hbm [shape: f32[16,32], index: 5, kind: output, shape index: {}]  }
   0x1   :  { %v26_v0 = vld [vmem:[%s288_s1 + $0x18] sm:$0xff]  ;;  %v25_v1 = vld [vmem:[%s288_s1 + $0x10] sm:$0xff]  ;;  %v24_v2 = vld [vmem:[%s288_s1 + $0x8] sm:$0xff] }
   0x2   :  { %50 = vmatpush.msra.mxu0 %v26_v0  ;;  %v78_v3 = vld [vmem:[%s290_s3 + $0x78] sm:$0xff]  ;;  %v77_v4 = vld [vmem:[%s290_s3 + $0x70] sm:$0xff]  ;;  %v23_v5 = vld [vmem:[%s288_s1] sm:$0xff] }
   0x3   :  { %83 = vmatpush.msra.mxu1 %v78_v3  ;;  %v76_v6 = vld [vmem:[%s290_s3 + $0x68] sm:$0xff]  ;;  %128 = vmatpush.msra.mxu2 %v78_v3  ;;  %v21_v7 = vld [vmem:[%s287_s0] sm:$0xff] }
   0x4   :  { %51 = vmatpush.msra.mxu0 %v25_v1  ;;  %v75_v8 = vld [vmem:[%s290_s3 + $0x60] sm:$0xff] }
   0x5   :  { %84 = vmatpush.msra.mxu1 %v77_v4  ;;  %129 = vmatpush.msra.mxu2 %v77_v4 }
   0x6   :  { %52 = vmatpush.msra.mxu0 %v24_v2 }
   0x7   :  { %85 = vmatpush.msra.mxu1 %v76_v6 }
   0x8   :  { %53 = vmatpush.msra.mxu0 %v23_v5 }
   0x9   :  { %10 = vsyncpa [#allocation3], 0  ;;  %126 = vmatmul.msk.f32.vlgmr.msra.gmra.mxu0 %vm31_vm0, %v21_v7  ;;  %v74_v9 = vld [vmem:[%s290_s3 + $0x58] sm:$0xff]  ;;  %130 = vmatpush.msra.mxu2 %v76_v6  ;;  %v73_v10 = vld [vmem:[%s290_s3 + $0x50] sm:$0xff]  ;;  %s114_s15 = sshll.u32 %s292_s5, 4  ;;  %s176_s16 = smov 128   ;;  %s115_s15 = int_to_ptr.hbm [resolvable:$true] %s114_s15 }
   0xa   :  { %86 = vmatpush.msra.mxu1 %v75_v8  ;;  %v72_v11 = vld [vmem:[%s290_s3 + $0x48] sm:$0xff]  ;;  %v71_v13 = vld [vmem:[%s290_s3 + $0x40] sm:$0xff]  ;;  %v70_v14 = vld [vmem:[%s290_s3 + $0x38] sm:$0xff]  ;;  %s177_s17 = smov 8  }
   0xb   :  { %131 = vmatpush.msra.mxu2 %v75_v8  ;;  %v22_v12 = vld [vmem:[%s287_s0 + $0x8] sm:$0xff]  ;;  %v69_v15 = vld [vmem:[%s290_s3 + $0x30] sm:$0xff]  ;;  %v67_v17 = vld [vmem:[%s290_s3 + $0x20] sm:$0xff] }
   0xc   :  { %87 = vmatpush.msra.mxu1 %v74_v9  ;;  %v68_v16 = vld [vmem:[%s290_s3 + $0x28] sm:$0xff]  ;;  %v66_v18 = vld [vmem:[%s290_s3 + $0x18] sm:$0xff]  ;;  %v65_v19 = vld [vmem:[%s290_s3 + $0x10] sm:$0xff] }
   0xd   :  { %132 = vmatpush.msra.mxu2 %v74_v9  ;;  %v64_v20 = vld [vmem:[%s290_s3 + $0x8] sm:$0xff]  ;;  %v63_v21 = vld [vmem:[%s290_s3] sm:$0xff]  ;;  %s175_s3 = smov [#allocation2]  }
   0xe   :  { %88 = vmatpush.msra.mxu1 %v73_v10  ;;  %v147_v22 = vld [vmem:[%s289_s2] ss:$0 sm:$0xff]  ;;  %s112_s13 = sshll.u32 %s175_s3, 4  ;;  %s113_s13 = int_to_ptr.vmem [resolvable:$true] %s112_s13 }
   0xf   :  { %133 = vmatpush.msra.mxu2 %v73_v10  ;;  %v148_v29 = vld [vmem:[%s291_s4] ss:$0 sm:$0xff] }
  0x10   :  { %89 = vmatpush.msra.mxu1 %v72_v11 }
  0x11   :  { %127 = vmatmul.msk.f32.gmra.mxu0 %vm31_vm0, %v22_v12  ;;  %134 = vmatpush.msra.mxu2 %v72_v11 }
  0x12   :  { %90 = vmatpush.msra.mxu1 %v71_v13 }
  0x13   :  { %135 = vmatpush.msra.mxu2 %v71_v13 }
  0x14   :  { %91 = vmatpush.msra.mxu1 %v70_v14 }
  0x15   :  { %136 = vmatpush.msra.mxu2 %v70_v14 }
  0x16   :  { %92 = vmatpush.msra.mxu1 %v69_v15 }
  0x17   :  { %137 = vmatpush.msra.mxu2 %v69_v15 }
  0x18   :  { %93 = vmatpush.msra.mxu1 %v68_v16 }
  0x19   :  { %138 = vmatpush.msra.mxu2 %v68_v16 }
  0x1a   :  { %94 = vmatpush.msra.mxu1 %v67_v17 }
  0x1b   :  { %139 = vmatpush.msra.mxu2 %v67_v17 }
  0x1c   :  { %95 = vmatpush.msra.mxu1 %v66_v18 }
  0x1d   :  { %140 = vmatpush.msra.mxu2 %v66_v18 }
  0x1e   :  { %96 = vmatpush.msra.mxu1 %v65_v19 }
  0x1f   :  { %141 = vmatpush.msra.mxu2 %v65_v19 }
  0x20   :  { %97 = vmatpush.msra.mxu1 %v64_v20 }
  0x21   :  { %142 = vmatpush.msra.mxu2 %v64_v20 }
  0x22   :  { %98 = vmatpush.msra.mxu1 %v63_v21 }
  0x23   :  { %143 = vmatpush.msra.mxu2 %v63_v21 }
  0x86   :  { %v55_v23 = vpop.f32.mrf.mxu0 }
  0x87   :  { %v56_v24 = vadd.f32 %v147_v22, %v55_v23 }
  0x89   :  { %v61_v25 = vmax.f32 %v56_v24, 0.0 }
  0x8b   :  { %99 = vmatmul.f32.vlgmr.msra.gmra.mxu1 %v61_v25 }
  0x8e   :  { %v58_v26 = vpop.f32.mrf.mxu0 }
  0x8f   :  { %v59_v27 = vadd.f32 %v147_v22, %v58_v26 }
  0x91   :  { %v62_v28 = vmax.f32 %v59_v27, 0.0 }
  0x93   :  { %102 = vmatmul.f32.vlgmr.msra.gmra.mxu2 %v62_v28 }
 0x108   :  { %v100_v30 = vpop.f32.mrf.mxu1 }
 0x109   :  { %v101_v31 = vadd.f32 %v148_v29, %v100_v30 }
 0x10b   :  { %106 = vst.msk [vmem:[#allocation2] sm:$0xff] %vm31_vm0, %v101_v31 }
 0x116   :  { %v103_v32 = vpop.f32.mrf.mxu2 }
 0x117   :  { %v104_v33 = vadd.f32 %v148_v29, %v103_v32 }
 0x119   :  { %107 = vst.msk [vmem:[#allocation2 + $0x8] sm:$0xff] %vm31_vm0, %v104_v33 }
 0x11a   :  { %120 = dma.vmem_to_hbm [thread:$0]  %s113_s13, 256, %s115_s15, [#allocation3], %s176_s16, %s176_s16, %s177_s17  }
 0x11b   :  { %173 = dma.done.wait [#allocation3], 256  }
 0x11c   :  { %174 = vsyncadd [#allocation3], 4294967040 }
 0x11d   :  { %125 = vsyncpa [#allocation3], 1 }

</bundles_post_ra>
